<compile_context>
chip_gen: v6e
topology: v6e:2x2x1
jax: 0.10.0
libtpu: 0.0.40
codegen_flags: <defaults>
</compile_context>

<pallas_src>
import functools
import math

import jax
import jax.numpy as jnp
from jax.experimental import pallas as pl
from jax.experimental.pallas import tpu as pltpu

_LANES = 128                 # vreg lane width
_SMALL_BYTES = 1 << 20       # <= 1 MiB: single-block fast path (no pipeline)
_TILE_ROWS = 512             # rows per block on the tiled path
_TILE_LANES = 4 * _LANES     # 512-lane-wide slab on the tiled path

# Older jax releases call this TPUCompilerParams.
_CompilerParams = getattr(pltpu, "CompilerParams", None) or getattr(
    pltpu, "TPUCompilerParams")


def _round_up(x, m):
    return (x + m - 1) // m * m


def _uniform_from_bits(bits):
    """uint32 random bits -> f32 uniform in [0, 1) via the exponent bit trick."""
    if bits.dtype != jnp.uint32:
        bits = pltpu.bitcast(bits, jnp.uint32)
    one_to_two = pltpu.bitcast(
        (bits >> jnp.uint32(9)) | jnp.uint32(0x3F800000), jnp.float32)
    return one_to_two - jnp.float32(1.0)


def _noise_prng_kernel(seed_ref, x_ref, o_ref, *, std):
    """o = x + std * N(0,1), noise generated on-chip.

    seed_ref : SMEM int32[1] (scalar prefetch)
    x_ref / o_ref : VMEM (TM, W) blocks
    """
    # Per-block seed: without this every grid step (and every TensorCore on
    # multi-core parts) would produce identical, spatially-correlated noise.
    pltpu.prng_seed(seed_ref[0] + pl.program_id(0))

    shape = x_ref.shape
    if hasattr(pltpu, "stateful_normal"):
        # Leaves the kernel as essentially load + fma + store (HBM roofline).
        z = pltpu.stateful_normal(shape, jnp.float32)
    else:
        # Box-Muller fallback using BOTH outputs: one (u1,u2) pair covers two
        # output elements.  z0 = r*cos(t) and z1 = r*sin(t) from the same pair
        # are jointly independent N(0,1), so stacking them is statistically
        # correct and halves the EUP/VALU work per element.
        half = (shape[0] // 2, shape[1])
        u1 = _uniform_from_bits(pltpu.prng_random_bits(half))
        u2 = _uniform_from_bits(pltpu.prng_random_bits(half))
        r = jnp.sqrt(jnp.float32(-2.0) * jnp.log(jnp.float32(1.0) - u1))
        theta = jnp.float32(2.0 * math.pi) * u2
        z = jnp.concatenate([r * jnp.cos(theta), r * jnp.sin(theta)], axis=0)

    o_ref[...] = x_ref[...] + (jnp.float32(std) * z).astype(o_ref.dtype)


def _noise_add_kernel(x_ref, n_ref, o_ref):
    """Portable fallback kernel: add a pre-generated noise slab."""
    o_ref[...] = x_ref[...] + n_ref[...]


def _layout(total, itemsize):
    """Pick a lane-dense 2-D layout (rows, lanes) and a row-tile size."""
    if total * itemsize <= _SMALL_BYTES:
        w = _LANES
        rows = _round_up(pl.cdiv(total, w), 8)   # sublane multiple
        tm = rows                                # single block -> grid=(1,)
    else:
        w = _TILE_LANES
        tm = _TILE_ROWS                          # (512, 512) f32 block = 1 MiB
        rows = _round_up(pl.cdiv(total, w), tm)
    return rows, w, tm


def _noise_pallas_tpu(x2, tm, grid, std, seed):
    rows, w = x2.shape
    seed_arr = jnp.array([seed], dtype=jnp.int32)
    out2 = pl.pallas_call(
        functools.partial(_noise_prng_kernel, std=float(std)),
        out_shape=jax.ShapeDtypeStruct((rows, w), x2.dtype),
        grid_spec=pltpu.PrefetchScalarGridSpec(
            num_scalar_prefetch=1,
            grid=grid,
            in_specs=[pl.BlockSpec((tm, w), lambda i, sref: (i, 0))],
            out_specs=pl.BlockSpec((tm, w), lambda i, sref: (i, 0)),
        ),
        compiler_params=_CompilerParams(
            dimension_semantics=("parallel",),     # shard blocks across TCs
            vmem_limit_bytes=32 * 1024 * 1024,     # safe on v5e/v6e/v7x
        ),
        # x2 is input index 1 (after the seed): donate its HBM buffer so this
        # is an in-place "x += noise" with no second full-size allocation.
        input_output_aliases={1: 0},
    )(seed_arr, x2)
    return jax.block_until_ready(out2)


def _noise_pallas_fallback(x2, tm, grid, std, seed):
    rows, w = x2.shape
    key = jax.random.PRNGKey(seed)
    noise2 = (jnp.float32(std) *
              jax.random.normal(key, (rows, w), jnp.float32)).astype(x2.dtype)
    return pl.pallas_call(
        _noise_add_kernel,
        out_shape=jax.ShapeDtypeStruct((rows, w), x2.dtype),
        grid=grid,
        in_specs=[pl.BlockSpec((tm, w), lambda i: (i, 0)),
                  pl.BlockSpec((tm, w), lambda i: (i, 0))],
        out_specs=pl.BlockSpec((tm, w), lambda i: (i, 0)),
    )(x2, noise2)


def noise_forward(x, std, seed=0, test=False):
    """JAX/Pallas equivalent of Noise.forward: x + N(0, std^2) noise.

    `test` only changes buffer caching in the PyTorch module (the computation
    is the same Gaussian perturbation), so it is ignored here.
    """
    # TODO(synk): PyTorch's module caches a buffer object across calls; this
    # implementation is stateless and redraws noise per call from `seed`.
    del test
    if std is None or float(std) <= 0.0:
        return x

    orig_shape = x.shape
    total = math.prod(orig_shape)
    rows, w, tm = _layout(total, x.dtype.itemsize)
    grid = (rows // tm,)

    # Lane-dense flattening (+ zero pad) so every store is a full-lane write.
    x_flat = x.reshape(-1)
    padded = rows * w
    if padded != total:
        x_flat = jnp.pad(x_flat, (0, padded - total))
    x2 = x_flat.reshape(rows, w)

    out2 = None
    if jax.devices()[0].platform == "tpu":
        try:
            out2 = _noise_pallas_tpu(x2, tm, grid, std, seed)
        except Exception:
            out2 = None  # e.g. forced interpret mode: TPU PRNG not lowerable
    if out2 is None:
        out2 = _noise_pallas_fallback(x2, tm, grid, std, seed)

    out_flat = out2.reshape(-1)
    if padded != total:
        out_flat = out_flat[:total]
    return out_flat.reshape(orig_shape)


if __name__ == "__main__":
    key = jax.random.PRNGKey(0)
    # Small NCHW activation tensor, consistent with a wide-resnet feature map.
    x = jax.random.normal(key, (2, 4, 16, 16), dtype=jnp.float32)
    std = 0.1

    y = jax.block_until_ready(noise_forward(x, std, seed=0))
    assert y.shape == x.shape and y.dtype == x.dtype
    diff = y - x
    assert bool(jnp.all(jnp.isfinite(diff)))
    mx = float(jnp.abs(diff).max())
    assert 0.0 < mx < 10.0 * std  # noise present, sane magnitude

    # std == 0 path: identity.
    assert jnp.array_equal(noise_forward(x, 0.0), x)

    # Larger activation exercises the tiled / double-buffered grid path.
    xb = jax.random.normal(jax.random.PRNGKey(1), (8, 64, 32, 32), jnp.float32)
    yb = jax.block_until_ready(noise_forward(xb, 0.2, seed=3))
    assert yb.shape == xb.shape and bool(jnp.all(jnp.isfinite(yb - xb)))

    print("KERNEL_OK")
</pallas_src>

<mosaic_0001>
module attributes {stable_mosaic.version = 11 : i64} {
  func.func @_noise_add_kernel(%arg0: i32, %arg1: memref<16x128xf32, #tpu.memory_space<vmem>>, %arg2: memref<16x128xf32, #tpu.memory_space<vmem>>, %arg3: memref<16x128xf32, #tpu.memory_space<vmem>>) attributes {dimension_semantics = [#tpu.dimension_semantics<arbitrary>], iteration_bounds = array<i64: 1>, scalar_prefetch = 0 : i64, scratch_operands = 0 : i64, tpu.core_type = #tpu.core_type<tc>, window_params = [{transform_indices = @transform_0, window_bounds = array<i64: 16, 128>}, {transform_indices = @transform_1, window_bounds = array<i64: 16, 128>}, {transform_indices = @transform_2, window_bounds = array<i64: 16, 128>}]} {
    %c0 = arith.constant 0 : index
    %c0_0 = arith.constant 0 : index
    %0 = vector.load %arg1[%c0, %c0_0] : memref<16x128xf32, #tpu.memory_space<vmem>>, vector<16x128xf32>
    %c0_1 = arith.constant 0 : index
    %c0_2 = arith.constant 0 : index
    %1 = vector.load %arg2[%c0_1, %c0_2] : memref<16x128xf32, #tpu.memory_space<vmem>>, vector<16x128xf32>
    %2 = arith.addf %0, %1 : vector<16x128xf32>
    %c0_3 = arith.constant 0 : index
    %c0_4 = arith.constant 0 : index
    %3 = vector.load %arg3[%c0_3, %c0_4] : memref<16x128xf32, #tpu.memory_space<vmem>>, vector<16x128xf32>
    tpu.vector_store %arg3[%c0_3, %c0_4], %2 {strides = array<i32>} : memref<16x128xf32, #tpu.memory_space<vmem>>, vector<16x128xf32>,
    return
  }
  func.func @transform_0(%arg0: i32) -> (i32, i32) {
    %c0_i32 = arith.constant 0 : i32
    %c0_i32_0 = arith.constant 0 : i32
    return %arg0, %c0_i32 : i32, i32
  }
  func.func @transform_1(%arg0: i32) -> (i32, i32) {
    %c0_i32 = arith.constant 0 : i32
    %c0_i32_0 = arith.constant 0 : i32
    return %arg0, %c0_i32 : i32, i32
  }
  func.func @transform_2(%arg0: i32) -> (i32, i32) {
    %c0_i32 = arith.constant 0 : i32
    %c0_i32_0 = arith.constant 0 : i32
    return %arg0, %c0_i32 : i32, i32
  }
}

</mosaic_0001>

<bundles_post_ra>
// kernel: tpu_custom_call.1
= control target key start
LH: loop header
LB: loop body
LE: loop exit
PB: predicated region body
PF: predicated region fallthrough
CT: control target
= control target key end

     0   :  { %7 = vsyncpa [#allocation3], 0  ;;  %s175_s0 = inlined_call_operand.hbm [shape: f32[16,128], index: 0, kind: input, shape index: {}]   ;;  %s176_s1 = inlined_call_operand.hbm [shape: f32[16,128], index: 1, kind: input, shape index: {}]   ;;  %s177_s2 = inlined_call_operand.hbm [shape: f32[16,128], index: 2, kind: output, shape index: {}]  }
   0x1   :  { %8 = vsyncpa [#allocation6], 0 }
   0x2   :  { %9 = vsyncpa [#allocation4], 0  ;;  %s137_s9 = smov [#allocation2]  }
   0x3   :  { %s15_s10 = sshll.u32 %s137_s9, 4  ;;  %s16_s10 = int_to_ptr.vmem [resolvable:$true] %s15_s10 }
   0x4   :  { %s79_s11 = scalar_lea.vmem %s16_s10, 256  ;;  %p84_p1 = scmp.lt.s32.totalorder %s16_s10, %s16_s10 }
   0x5   :  { %p80_p0 = scmp.ne.s32.totalorder %s16_s10, %s79_s11  ;;  %p85_p2 = scmp.lt.s32.totalorder %s79_s11, %s79_s11 }
   0x7   :  { %p86_p3 = por %p85_p2, %p84_p1 }
   0x9   :  { %p87_p4 = pnand %p86_p3, %p80_p0 }
   0xb   :  { %90 = shalt.err (!%p87_p4)
}
   0xc   :  { %s138_s12 = smov 128   ;;  %s139_s13 = smov 8  }
   0xd   :  { %21 = dma.hbm_to_vmem [thread:$0]  %s175_s0, 256, %s16_s10, [#allocation3], %s138_s12, %s138_s12, %s139_s13  }
   0xe   :  { %s140_s16 = smov [#allocation5]  }
   0xf   :  { %s27_s17 = sshll.u32 %s140_s16, 4  ;;  %s28_s17 = int_to_ptr.vmem [resolvable:$true] %s27_s17 }
  0x10   :  { %s99_s18 = scalar_lea.vmem %s28_s17, 256  ;;  %p104_p6 = scmp.lt.s32.totalorder %s28_s17, %s28_s17 }
  0x11   :  { %p100_p5 = scmp.ne.s32.totalorder %s28_s17, %s99_s18  ;;  %p105_p7 = scmp.lt.s32.totalorder %s99_s18, %s99_s18 }
  0x13   :  { %p106_p8 = por %p105_p7, %p104_p6 }
  0x15   :  { %p107_p9 = pnand %p106_p8, %p100_p5 }
  0x17   :  { %110 = shalt.err (!%p107_p9)
}
  0x18   :  { %33 = dma.hbm_to_vmem [thread:$0]  %s176_s1, 256, %s28_s17, [#allocation6], %s138_s12, %s138_s12, %s139_s13  }
  0x19   :  { %131 = dma.done.wait [#allocation3], 256  }
  0x1a   :  { %132 = vsyncadd [#allocation3], 4294967040 }
  0x1b   :  { %133 = dma.done.wait [#allocation6], 256  }
  0x1c   :  { %134 = vsyncadd [#allocation6], 4294967040  ;;  %s141_s0 = smov [#allocation7]   ;;  %v40_v0 = vld [vmem:[#allocation2] sm:$0xff]  ;;  %v42_v1 = vld [vmem:[#allocation5] sm:$0xff] }
  0x1d   :  { %s53_s21 = sshll.u32 %s141_s0, 4  ;;  %v41_v2 = vld [vmem:[#allocation2 + $0x8] sm:$0xff]  ;;  %v44_v3 = vadd.f32 %v42_v1, %v40_v0  ;;  %v43_v4 = vld [vmem:[#allocation5 + $0x8] sm:$0xff]  ;;  %s54_s21 = int_to_ptr.vmem [resolvable:$true] %s53_s21 }
  0x1e   :  { %v45_v5 = vadd.f32 %v43_v4, %v41_v2  ;;  %s111_s22 = scalar_lea.vmem %s54_s21, 256  ;;  %p116_p11 = scmp.lt.s32.totalorder %s54_s21, %s54_s21 }
  0x1f   :  { %46 = vst [vmem:[#allocation7] sm:$0xff] %v44_v3  ;;  %p112_p10 = scmp.ne.s32.totalorder %s54_s21, %s111_s22  ;;  %p117_p12 = scmp.lt.s32.totalorder %s111_s22, %s111_s22 }
  0x20   :  { %47 = vst [vmem:[#allocation7 + $0x8] sm:$0xff] %v45_v5 }
  0x21   :  { %p118_p13 = por %p117_p12, %p116_p11 }
  0x23   :  { %p119_p0 = pnand %p118_p13, %p112_p10 }
  0x25   :  { %122 = shalt.err (!%p119_p0)
}
  0x26   :  { %59 = dma.vmem_to_hbm [thread:$0]  %s54_s21, 256, %s177_s2, [#allocation4], %s138_s12, %s138_s12, %s139_s13  }
  0x27   :  { %135 = dma.done.wait [#allocation4], 256  }
  0x28   :  { %136 = vsyncadd [#allocation4], 4294967040 }
  0x29   :  { %63 = vsyncpa [#allocation3], 1 }
  0x2a   :  { %64 = vsyncpa [#allocation6], 1 }
  0x2b   :  { %65 = vsyncpa [#allocation4], 1 }

</bundles_post_ra>
